<compile_context>
chip_gen: v6e
topology: v6e:2x2x1
jax: 0.10.0
libtpu: 0.0.40
codegen_flags: <defaults>
</compile_context>

<pallas_src>
import functools

import jax
import jax.numpy as jnp
from jax.experimental import pallas as pl
from jax.experimental.pallas import tpu as pltpu

IGNORE_INDEX = 255


def _ce_partial_kernel(logits_ref, target_ref, out_ref, *,
                       ignore_index, num_pixels, lanes_per_block, mask_lanes):
    """Per-block partial CE sum + valid-pixel count.

    logits_ref: (TN, C, TL)  classes on sublanes, pixels on lanes
    target_ref: (TN, 1, TL)  integer targets (any int dtype)
    out_ref:    (1, 2) SMEM -> [ce_sum, valid_count]
    """
    x = logits_ref[...].astype(jnp.float32)                             # (TN,C,TL)
    t = target_ref[...].astype(jnp.int32)                               # (TN,1,TL)

    # numerically stable log-sum-exp over the class (sublane) axis
    m = jnp.max(x, axis=1, keepdims=True)                               # (TN,1,TL)
    lse = jnp.log(jnp.sum(jnp.exp(x - m), axis=1, keepdims=True)) + m   # (TN,1,TL)

    # gather the target-class logit via a sublane one-hot select
    cls = jax.lax.broadcasted_iota(jnp.int32, x.shape, 1)               # (TN,C,TL)
    tgt_logit = jnp.sum(jnp.where(cls == t, x, 0.0), axis=1, keepdims=True)

    ce = lse - tgt_logit                                                # (TN,1,TL)

    valid = t != ignore_index
    if mask_lanes:
        # ragged last pixel block: exclude lanes past the real pixel count
        lane = jax.lax.broadcasted_iota(jnp.int32, t.shape, 2)
        pix = pl.program_id(1) * lanes_per_block + lane
        valid = valid & (pix < num_pixels)

    out_ref[0, 0] = jnp.sum(jnp.where(valid, ce, 0.0))
    out_ref[0, 1] = jnp.sum(valid.astype(jnp.float32))   # exact: count < 2**24


def _pick_vmem_limit_bytes():
    try:
        cap = int(pltpu.get_tpu_info().vmem_capacity_bytes)
    except Exception:
        cap = 0
    if cap <= 0:
        cap = 64 * 1024 * 1024          # conservative fallback (v7x per-TC VMEM)
    # 3/4 of physical, capped at 64 MiB: v5e/v6e -> 64 MiB, v7x -> 48 MiB
    return int(min(64 * 1024 * 1024, (cap * 3) // 4))


def focal_loss_2d(logits_nchw, target_nhw, *, alpha=0.5, gamma=2.0,
                  ignore_index=IGNORE_INDEX, size_average=True,
                  _max_lanes_override=None):
    N, C, H, W = logits_nchw.shape
    HW = H * W

    # Free (contiguous) reshapes -- classes on sublanes, pixels on lanes.
    x = logits_nchw.reshape(N, C, HW)
    t = target_nhw.reshape(N, 1, HW)
    if not jnp.issubdtype(t.dtype, jnp.integer):
        t = t.astype(jnp.int32)

    vmem_limit = _pick_vmem_limit_bytes()

    # Tile sizing: double-buffered inputs plus ~4 (C, TL) f32 temporaries the
    # kernel body materialises.  Leave a small margin for outputs/overheads.
    x_bytes = jnp.dtype(x.dtype).itemsize
    t_bytes = jnp.dtype(t.dtype).itemsize
    k_tmp = 4
    per_lane = 2 * (C * x_bytes + t_bytes) + k_tmp * 4 * C
    budget = max(per_lane * 128, vmem_limit - (2 << 20))
    max_lanes = budget // per_lane
    if _max_lanes_override is not None:
        max_lanes = int(_max_lanes_override)

    if HW <= max_lanes:
        # Whole image fits in one tile: block several batch images per step.
        # TN must divide N so no batch mask is needed inside the kernel.
        TL, num_j = HW, 1
        cap_tn = max(1, max_lanes // HW)
        TN = 1
        for d in range(min(N, cap_tn), 0, -1):
            if N % d == 0:
                TN = d
                break
    else:
        TL = max(128, (max_lanes // 128) * 128)   # lane axis multiple of 128
        num_j = pl.cdiv(HW, TL)
        TN = 1
    NB = N // TN

    kernel = functools.partial(
        _ce_partial_kernel,
        ignore_index=int(ignore_index),
        num_pixels=HW,
        lanes_per_block=TL,
        mask_lanes=(HW % TL != 0))

    part = pl.pallas_call(
        kernel,
        out_shape=jax.ShapeDtypeStruct((NB, 2 * num_j), jnp.float32),
        grid_spec=pltpu.PrefetchScalarGridSpec(
            num_scalar_prefetch=0,
            grid=(NB, num_j),
            in_specs=[
                pl.BlockSpec((TN, C, TL), lambda n, j: (n, 0, j)),
                pl.BlockSpec((TN, 1, TL), lambda n, j: (n, 0, j)),
            ],
            out_specs=pl.BlockSpec((1, 2), lambda n, j: (n, j),
                                   memory_space=pltpu.SMEM),
        ),
        compiler_params=pltpu.CompilerParams(
            dimension_semantics=("parallel", "parallel"),
            vmem_limit_bytes=vmem_limit,
        ),
    )(x, t)

    # Tiny tree-sum over per-block partials.  Per-block counts are exact in
    # f32 (< 2**24), so casting to int32 before the host-side sum keeps the
    # total valid-pixel count exact for any problem size.
    pairs = part.reshape(NB, num_j, 2)
    ce_sum = jnp.sum(pairs[..., 0])
    cnt = jnp.sum(pairs[..., 1].astype(jnp.int32))
    # Guard against all-ignored pixels (torch would give nan there).
    logpt = ce_sum / jnp.maximum(cnt.astype(jnp.float32), 1.0)
    pt = jnp.exp(-logpt)
    loss = (1.0 - pt) ** gamma * alpha * logpt
    # size_average: mean()/sum() of a 0-d value is the value itself
    return loss


def _reference_loss(logits_nchw, target_nhw, *, alpha=0.5, gamma=2.0,
                    ignore_index=IGNORE_INDEX):
    N, C, H, W = logits_nchw.shape
    x = jnp.transpose(logits_nchw, (0, 2, 3, 1)).reshape(-1, C)
    t = target_nhw.reshape(-1).astype(jnp.int32)
    logp = jax.nn.log_softmax(x.astype(jnp.float32), axis=-1)
    safe_t = jnp.clip(t, 0, C - 1)
    ce = -jnp.take_along_axis(logp, safe_t[:, None], axis=-1)[:, 0]
    valid = (t != ignore_index)
    logpt = jnp.sum(jnp.where(valid, ce, 0.0)) / jnp.maximum(
        jnp.sum(valid.astype(jnp.float32)), 1.0)
    pt = jnp.exp(-logpt)
    return (1.0 - pt) ** gamma * alpha * logpt


def _make_inputs(key, N, C, H, W):
    k1, k2, k3 = jax.random.split(key, 3)
    logits = jax.random.normal(k1, (N, C, H, W), dtype=jnp.float32)
    target = jax.random.randint(k2, (N, H, W), 0, C, dtype=jnp.int32)
    drop = jax.random.bernoulli(k3, 0.1, (N, H, W))
    target = jnp.where(drop, jnp.int32(IGNORE_INDEX), target)
    return logits, target


if __name__ == "__main__":
    key = jax.random.PRNGKey(0)
    ka, kb = jax.random.split(key, 2)

    # 1) default path: whole image per tile, batch images blocked together
    logits, target = _make_inputs(ka, 2, 4, 16, 16)
    loss = jax.block_until_ready(focal_loss_2d(logits, target, alpha=0.5, gamma=2.0))
    ref = _reference_loss(logits, target, alpha=0.5, gamma=2.0)
    assert jnp.allclose(loss, ref, rtol=1e-5, atol=1e-6), (loss, ref)

    # 2) pixel-tiled path (force small tiles): multiple pixel blocks per image
    loss2 = jax.block_until_ready(
        focal_loss_2d(logits, target, alpha=0.5, gamma=2.0, _max_lanes_override=128))
    assert jnp.allclose(loss2, ref, rtol=1e-5, atol=1e-6), (loss2, ref)

    # 3) ragged last pixel block (H*W not a multiple of 128), masked in-kernel
    logits3, target3 = _make_inputs(kb, 2, 4, 15, 15)
    loss3 = jax.block_until_ready(
        focal_loss_2d(logits3, target3, alpha=0.5, gamma=2.0, _max_lanes_override=128))
    ref3 = _reference_loss(logits3, target3, alpha=0.5, gamma=2.0)
    assert jnp.allclose(loss3, ref3, rtol=1e-5, atol=1e-6), (loss3, ref3)

    print("KERNEL_OK")
</pallas_src>

<mosaic_0001>
module attributes {stable_mosaic.version = 11 : i64} {
  func.func @_ce_partial_kernel(%arg0: i32, %arg1: i32, %arg2: memref<2x4x256xf32, #tpu.memory_space<vmem>>, %arg3: memref<2x1x256xi32, #tpu.memory_space<vmem>>, %arg4: memref<1x2xf32, #tpu.memory_space<smem>>) attributes {dimension_semantics = [#tpu.dimension_semantics<parallel>, #tpu.dimension_semantics<parallel>], iteration_bounds = array<i64: 1, 1>, scalar_prefetch = 0 : i64, scratch_operands = 0 : i64, tpu.core_type = #tpu.core_type<tc>, window_params = [{transform_indices = @transform_0, window_bounds = array<i64: 2, 4, 256>}, {transform_indices = @transform_1, window_bounds = array<i64: 2, 1, 256>}, {transform_indices = @transform_2, window_bounds = array<i64: 1, 2>}]} {
    %c0 = arith.constant 0 : index
    %c0_0 = arith.constant 0 : index
    %c0_1 = arith.constant 0 : index
    %0 = vector.load %arg2[%c0, %c0_0, %c0_1] : memref<2x4x256xf32, #tpu.memory_space<vmem>>, vector<2x4x256xf32>
    %c0_2 = arith.constant 0 : index
    %c0_3 = arith.constant 0 : index
    %c0_4 = arith.constant 0 : index
    %1 = vector.load %arg3[%c0_2, %c0_3, %c0_4] : memref<2x1x256xi32, #tpu.memory_space<vmem>>, vector<2x1x256xi32>
    %cst = arith.constant dense<0xFF800000> : vector<2x256xf32>
    %2 = vector.multi_reduction <maximumf>, %0, %cst [1] : vector<2x4x256xf32> to vector<2x256xf32>
    %3 = vector.shape_cast %2 : vector<2x256xf32> to vector<2x1x256xf32>
    %4 = vector.broadcast %3 : vector<2x1x256xf32> to vector<2x4x256xf32>
    %5 = arith.subf %0, %4 : vector<2x4x256xf32>
    %6 = math.exp %5 : vector<2x4x256xf32>
    %cst_5 = arith.constant dense<0.000000e+00> : vector<2x256xf32>
    %7 = vector.multi_reduction <add>, %6, %cst_5 [1] : vector<2x4x256xf32> to vector<2x256xf32>
    %8 = vector.shape_cast %7 : vector<2x256xf32> to vector<2x1x256xf32>
    %9 = math.log %8 : vector<2x1x256xf32>
    %10 = arith.addf %9, %3 : vector<2x1x256xf32>
    %11 = tpu.iota {dimensions = array<i32: 1>} : vector<2x4x256xi32>
    %12 = vector.broadcast %1 : vector<2x1x256xi32> to vector<2x4x256xi32>
    %13 = arith.cmpi eq, %11, %12 : vector<2x4x256xi32>
    %cst_6 = arith.constant 0.000000e+00 : f32
    %14 = vector.broadcast %cst_6 : f32 to vector<2x4x256xf32>
    %15 = arith.select %13, %0, %14 : vector<2x4x256xi1>, vector<2x4x256xf32>
    %cst_7 = arith.constant dense<0.000000e+00> : vector<2x256xf32>
    %16 = vector.multi_reduction <add>, %15, %cst_7 [1] : vector<2x4x256xf32> to vector<2x256xf32>
    %17 = vector.shape_cast %16 : vector<2x256xf32> to vector<2x1x256xf32>
    %18 = arith.subf %10, %17 : vector<2x1x256xf32>
    %c255_i32 = arith.constant 255 : i32
    %19 = vector.broadcast %c255_i32 : i32 to vector<2x1x256xi32>
    %20 = arith.cmpi ne, %1, %19 : vector<2x1x256xi32>
    %cst_8 = arith.constant 0.000000e+00 : f32
    %21 = vector.broadcast %cst_8 : f32 to vector<2x1x256xf32>
    %22 = arith.select %20, %18, %21 : vector<2x1x256xi1>, vector<2x1x256xf32>
    %23 = vector.shape_cast %22 : vector<2x1x256xf32> to vector<1x2x1x256xf32>
    %cst_9 = arith.constant dense<0.000000e+00> : vector<1xf32>
    %24 = vector.multi_reduction <add>, %23, %cst_9 [1, 2, 3] : vector<1x2x1x256xf32> to vector<1xf32>
    %25 = vector.shape_cast %24 : vector<1xf32> to vector<1x1x1x1xf32>
    %26 = vector.extract %25[0, 0, 0, 0] : f32 from vector<1x1x1x1xf32>
    %c0_10 = arith.constant 0 : index
    %c0_11 = arith.constant 0 : index
    %27 = memref.load %arg4[%c0_10, %c0_11] : memref<1x2xf32, #tpu.memory_space<smem>>
    memref.store %26, %arg4[%c0_10, %c0_11] : memref<1x2xf32, #tpu.memory_space<smem>>
    %28 = arith.extui %20 : vector<2x1x256xi1> to vector<2x1x256xi32>
    %29 = arith.sitofp %28 : vector<2x1x256xi32> to vector<2x1x256xf32>
    %30 = vector.shape_cast %29 : vector<2x1x256xf32> to vector<1x2x1x256xf32>
    %cst_12 = arith.constant dense<0.000000e+00> : vector<1xf32>
    %31 = vector.multi_reduction <add>, %30, %cst_12 [1, 2, 3] : vector<1x2x1x256xf32> to vector<1xf32>
    %32 = vector.shape_cast %31 : vector<1xf32> to vector<1x1x1x1xf32>
    %33 = vector.extract %32[0, 0, 0, 0] : f32 from vector<1x1x1x1xf32>
    %c0_13 = arith.constant 0 : index
    %c1 = arith.constant 1 : index
    %34 = memref.load %arg4[%c0_13, %c1] : memref<1x2xf32, #tpu.memory_space<smem>>
    memref.store %33, %arg4[%c0_13, %c1] : memref<1x2xf32, #tpu.memory_space<smem>>
    return
  }
  func.func @transform_0(%arg0: i32, %arg1: i32) -> (i32, i32, i32) {
    %c0_i32 = arith.constant 0 : i32
    %c0_i32_0 = arith.constant 0 : i32
    return %arg0, %c0_i32, %arg1 : i32, i32, i32
  }
  func.func @transform_1(%arg0: i32, %arg1: i32) -> (i32, i32, i32) {
    %c0_i32 = arith.constant 0 : i32
    %c0_i32_0 = arith.constant 0 : i32
    return %arg0, %c0_i32, %arg1 : i32, i32, i32
  }
  func.func @transform_2(%arg0: i32, %arg1: i32) -> (i32, i32) {
    %c0_i32 = arith.constant 0 : i32
    return %arg0, %arg1 : i32, i32
  }
}

</mosaic_0001>

<bundles_post_ra>
// kernel: tpu_custom_call.1
= control target key start
LH: loop header
LB: loop body
LE: loop exit
PB: predicated region body
PF: predicated region fallthrough
CT: control target
= control target key end

     0   :  { %7 = vsyncpa [#allocation3], 0  ;;  %s574_s0 = inlined_call_operand.hbm [shape: f32[2,4,256], index: 0, kind: input, shape index: {}]   ;;  %s575_s1 = inlined_call_operand.hbm [shape: s32[2,1,256], index: 1, kind: input, shape index: {}]   ;;  %s576_s2 = inlined_call_operand.hbm [shape: f32[1,2], index: 2, kind: output, shape index: {}]  }
   0x1   :  { %8 = vsyncpa [#allocation6], 0 }
   0x2   :  { %9 = vsyncpa [#allocation4], 0  ;;  %s420_s9 = smov [#allocation2]  }
   0x3   :  { %s15_s10 = sshll.u32 %s420_s9, 4  ;;  %s16_s10 = int_to_ptr.vmem [resolvable:$true] %s15_s10 }
   0x4   :  { %s374_s11 = scalar_lea.vmem %s16_s10, 256  ;;  %p379_p1 = scmp.lt.s32.totalorder %s16_s10, %s16_s10 }
   0x5   :  { %p375_p0 = scmp.ne.s32.totalorder %s16_s10, %s374_s11  ;;  %p380_p2 = scmp.lt.s32.totalorder %s374_s11, %s374_s11 }
   0x7   :  { %p381_p3 = por %p380_p2, %p379_p1 }
   0x9   :  { %p382_p4 = pnand %p381_p3, %p375_p0 }
   0xb   :  { %385 = shalt.err (!%p382_p4)
}
   0xc   :  { %s421_s12 = smov 128   ;;  %s422_s13 = smov 8  }
   0xd   :  { %21 = dma.hbm_to_vmem [thread:$0]  %s574_s0, 256, %s16_s10, [#allocation3], %s421_s12, %s421_s12, %s422_s13  }
   0xe   :  { %s423_s16 = smov [#allocation5]  }
   0xf   :  { %s27_s17 = sshll.u32 %s423_s16, 4  ;;  %s28_s17 = int_to_ptr.vmem [resolvable:$true] %s27_s17 }
  0x10   :  { %s394_s18 = scalar_lea.vmem %s28_s17, 64  ;;  %p399_p6 = scmp.lt.s32.totalorder %s28_s17, %s28_s17 }
  0x11   :  { %p395_p5 = scmp.ne.s32.totalorder %s28_s17, %s394_s18  ;;  %p400_p7 = scmp.lt.s32.totalorder %s394_s18, %s394_s18 }
  0x13   :  { %p401_p8 = por %p400_p7, %p399_p6 }
  0x15   :  { %p402_p9 = pnand %p401_p8, %p395_p5 }
  0x17   :  { %405 = shalt.err (!%p402_p9)
}
  0x18   :  { %s424_s19 = smov 32   ;;  %s425_s20 = smov 2  }
  0x19   :  { %33 = dma.hbm_to_vmem [thread:$0]  %s575_s1, 64, %s28_s17, [#allocation6], %s424_s19, %s424_s19, %s425_s20  }
  0x1a   :  { %414 = dma.done.wait [#allocation3], 256  }
  0x1b   :  { %415 = vsyncadd [#allocation3], 4294967040 }
  0x1c   :  { %416 = dma.done.wait [#allocation6], 64  }
  0x1d   :  { %417 = vsyncadd [#allocation6], 4294967232  ;;  %vm50_vm0 = vcmask 1043456   ;;  %v450_v0 = vld [vmem:[#allocation2] sm:$0xff]  ;;  %v452_v1 = vld [vmem:[#allocation2 + $0x8] sm:$0xff]  ;;  %v139_v36 = vlaneseq  ;;  %vm259_vm7 = vcmask 1040384  }
  0x1e   :  { %v456_v2 = vcombine.high %v450_v0, %v450_v0  ;;  %v460_v3 = vcombine.high %v452_v1, %v452_v1  ;;  %v51_v4 = vsel %vm50_vm0, %v450_v0, -inf  ;;  %v65_v5 = vsel %vm50_vm0, %v452_v1, -inf  ;;  %v489_v41 = vld [vmem:[#allocation5] sm:$0x3]  ;;  %v491_v42 = vld [vmem:[#allocation5 + $0x2] sm:$0x3] }
  0x1f   :  { %v52_v6 = vrot.slane %v51_v4, 4  ;;  %v66_v7 = vrot.slane %v65_v5, 4  ;;  %v484_v39 = vshrl.u32 %v139_v36, 7  ;;  %vm197_vm5 = vcmp.ne.s32.totalorder %v489_v41, 255  ;;  %s428_s23 = smov [#allocation7]  }
  0x20   :  { %v58_v8 = vsel %vm50_vm0, %v456_v2, -inf  ;;  %v72_v9 = vsel %vm50_vm0, %v460_v3, -inf  ;;  %vm198_vm6 = vcmp.ne.s32.totalorder %v491_v42, 255 }
  0x21   :  { %v53_v10 = vmax.f32 %v51_v4, %v52_v6  ;;  %v59_v11 = vrot.slane %v58_v8, 4  ;;  %v67_v12 = vmax.f32 %v65_v5, %v66_v7  ;;  %v73_v13 = vrot.slane %v72_v9, 4 }
  0x22   :  { %v487_v40 = vsub.s32 0, %v484_v39  ;;  %v494_v43 = vsub.s32 1, %v484_v39 }
  0x23   :  { %v54_v14 = vrot.slane %v53_v10, 2  ;;  %v60_v15 = vmax.f32 %v58_v8, %v59_v11  ;;  %v68_v16 = vrot.slane %v67_v12, 2  ;;  %v74_v17 = vmax.f32 %v72_v9, %v73_v13 }
  0x24   :  { %v144_v44 = vrot.slane %v489_v41, %v487_v40  ;;  %v152_v45 = vrot.slane %v491_v42, %v487_v40  ;;  %v148_v46 = vrot.slane %v489_v41, %v494_v43  ;;  %v156_v47 = vrot.slane %v491_v42, %v494_v43 }
  0x25   :  { %v55_v18 = vmax.f32 %v53_v10, %v54_v14  ;;  %v61_v19 = vrot.slane %v60_v15, 2  ;;  %v69_v20 = vmax.f32 %v67_v12, %v68_v16  ;;  %v75_v21 = vrot.slane %v74_v17, 2 }
  0x26   :  { %vm505_vm1 = vcmp.eq.s32.totalorder %v484_v39, %v144_v44  ;;  %vm510_vm2 = vcmp.eq.s32.totalorder %v484_v39, %v152_v45  ;;  %vm516_vm3 = vcmp.eq.s32.totalorder %v484_v39, %v148_v46  ;;  %vm521_vm4 = vcmp.eq.s32.totalorder %v484_v39, %v156_v47 }
  0x27   :  { %v56_v22 = vrot.slane %v55_v18, 1  ;;  %v62_v23 = vmax.f32 %v60_v15, %v61_v19  ;;  %v70_v24 = vrot.slane %v69_v20, 1  ;;  %v76_v25 = vmax.f32 %v74_v17, %v75_v21 }
  0x28   :  { %v161_v59 = vsel %vm505_vm1, %v450_v0, 0.0  ;;  %v163_v62 = vsel %vm510_vm2, %v452_v1, 0.0  ;;  %v162_v6 = vsel %vm516_vm3, %v456_v2, 0.0 }
  0x29   :  { %v470_v26 = vmax.f32 %v55_v18, %v56_v22  ;;  %v63_v27 = vrot.slane %v62_v23, 1  ;;  %v472_v28 = vmax.f32 %v69_v20, %v70_v24  ;;  %v77_v29 = vrot.slane %v76_v25, 1 }
  0x2a   :  { %v165_v9 = vsel %vm50_vm0, %v161_v59, 0.0  ;;  %v172_v14 = vsel %vm50_vm0, %v162_v6, 0.0 }
  0x2b   :  { %v474_v30 = vmax.f32 %v62_v23, %v63_v27  ;;  %v476_v31 = vmax.f32 %v76_v25, %v77_v29  ;;  %v166_v17 = vrot.slane %v165_v9, 4  ;;  %v173_v22 = vrot.slane %v172_v14, 4 }
  0x2d   :  { %v83_v32 = vcombine.low %v470_v26, %v474_v30  ;;  %v84_v33 = vcombine.low %v472_v28, %v476_v31 }
  0x2f   :  { %v87_v34 = vsub.f32 %v450_v0, %v83_v32  ;;  %v88_v35 = vsub.f32 %v452_v1, %v84_v33  ;;  %v164_v0 = vsel %vm521_vm4, %v460_v3, 0.0  ;;  %v179_v1 = vsel %vm50_vm0, %v163_v62, 0.0 }
  0x30   :  { %v186_v2 = vsel %vm50_vm0, %v164_v0, 0.0  ;;  %v180_v20 = vrot.slane %v179_v1, 4  ;;  %v167_v32 = vadd.f32 %v166_v17, %v165_v9 }
  0x31   :  { %v89_v37 = vmul.f32 1.442695, %v87_v34  ;;  %v91_v38 = vmul.f32 1.442695, %v88_v35  ;;  %v187_v25 = vrot.slane %v186_v2, 4 }
  0x32   :  { %v181_v35 = vadd.f32 %v180_v20, %v179_v1  ;;  %v168_v45 = vrot.slane %v167_v32, 2 }
  0x33   :  { %354 = vpow2.f32 %v89_v37  ;;  %v174_v37 = vadd.f32 %v173_v22, %v172_v14  ;;  %v188_v44 = vadd.f32 %v187_v25, %v186_v2  ;;  %v427_v2 = vmov 0.0  }
  0x34   :  { %356 = vpow2.f32 %v91_v38  ;;  %v182_v46 = vrot.slane %v181_v35, 2 }
  0x35   :  { %v175_v47 = vrot.slane %v174_v37, 2  ;;  %v189_v48 = vrot.slane %v188_v44, 2 }
  0x36   :  { %v183_v50 = vadd.f32 %v182_v46, %v181_v35 }
  0x38   :  { %v184_v54 = vrot.slane %v183_v50, 1 }
  0x40   :  { %v355_v49 = vpop.eup %354 }
  0x41   :  { %v357_v51 = vpop.eup %356  ;;  %v95_v52 = vcombine.high %v355_v49, %v355_v49  ;;  %v99_v53 = vsel %vm50_vm0, %v355_v49, 0.0  ;;  %v169_v49 = vadd.f32 %v168_v45, %v167_v32 }
  0x42   :  { %v96_v56 = vcombine.high %v357_v51, %v357_v51  ;;  %v100_v57 = vrot.slane %v99_v53, 4  ;;  %v113_v58 = vsel %vm50_vm0, %v357_v51, 0.0  ;;  %v176_v51 = vadd.f32 %v175_v47, %v174_v37 }
  0x43   :  { %v106_v60 = vsel %vm50_vm0, %v95_v52, 0.0  ;;  %v114_v61 = vrot.slane %v113_v58, 4  ;;  %v190_v52 = vadd.f32 %v189_v48, %v188_v44 }
  0x44   :  { %v101_v63 = vadd.f32 %v100_v57, %v99_v53  ;;  %v107_v4 = vrot.slane %v106_v60, 4  ;;  %v120_v5 = vsel %vm50_vm0, %v96_v56, 0.0  ;;  %v170_v53 = vrot.slane %v169_v49, 1 }
  0x45   :  { %v115_v7 = vadd.f32 %v114_v61, %v113_v58  ;;  %v121_v8 = vrot.slane %v120_v5, 4  ;;  %v177_v55 = vrot.slane %v176_v51, 1  ;;  %v426_v56 = vmov 1966171168  }
  0x46   :  { %v102_v10 = vrot.slane %v101_v63, 2  ;;  %v108_v11 = vadd.f32 %v107_v4, %v106_v60  ;;  %v205_v57 = vunpack.c.l.s4 %v426_v56  ;;  %v191_v59 = vrot.slane %v190_v52, 1 }
  0x47   :  { %v116_v12 = vrot.slane %v115_v7, 2  ;;  %v122_v13 = vadd.f32 %v121_v8, %v120_v5  ;;  %v171_v62 = vadd.f32 %v170_v53, %v169_v49  ;;  %v185_v5 = vadd.f32 %v184_v54, %v183_v50 }
  0x48   :  { %v103_v15 = vadd.f32 %v102_v10, %v101_v63  ;;  %v109_v16 = vrot.slane %v108_v11, 2  ;;  %v178_v0 = vadd.f32 %v177_v55, %v176_v51  ;;  %v206_v9 = vunpack.c.0.s8 %v205_v57 }
  0x49   :  { %v117_v18 = vadd.f32 %v116_v12, %v115_v7  ;;  %v123_v19 = vrot.slane %v122_v13, 2  ;;  %v192_v1 = vadd.f32 %v191_v59, %v190_v52 }
  0x4a   :  { %v104_v21 = vrot.slane %v103_v15, 1  ;;  %v110_v3 = vadd.f32 %v109_v16, %v108_v11  ;;  %v209_v17 = vsub.s32 %v206_v9, %v484_v39 }
  0x4b   :  { %v118_v23 = vrot.slane %v117_v18, 1  ;;  %v124_v24 = vadd.f32 %v123_v19, %v122_v13 }
  0x4c   :  { %v105_v27 = vadd.f32 %v104_v21, %v103_v15  ;;  %v111_v29 = vrot.slane %v110_v3, 1  ;;  %v338_v21 = vsel %vm198_vm6, 1.0, %v427_v2 }
  0x4d   :  { %v119_v33 = vadd.f32 %v118_v23, %v117_v18  ;;  %v125_v34 = vrot.slane %v124_v24, 1  ;;  %v295_v39 = vrot.slane %v338_v21, %v487_v40 }
  0x4e   :  { %v112_v36 = vadd.f32 %v111_v29, %v110_v3  ;;  %358 = vlog2.f32 %v105_v27 }
  0x4f   :  { %v126_v38 = vadd.f32 %v125_v34, %v124_v24  ;;  %360 = vlog2.f32 %v119_v33  ;;  %v307_v44 = vsel %vm259_vm7, %v295_v39, 0.0 }
  0x50   :  { %362 = vlog2.f32 %v112_v36 }
  0x51   :  { %364 = vlog2.f32 %v126_v38  ;;  %v299_v38 = vrot.slane %v338_v21, %v494_v43 }
  0x5b   :  { %v359_v58 = vpop.eup %358 }
  0x5c   :  { %v361_v60 = vpop.eup %360  ;;  %v128_v61 = vmul.f32 0.6931472, %v359_v58 }
  0x5d   :  { %v363_v63 = vpop.eup %362  ;;  %v132_v4 = vmul.f32 0.6931472, %v361_v60 }
  0x5e   :  { %v365_v6 = vpop.eup %364  ;;  %v130_v7 = vmul.f32 0.6931472, %v363_v63  ;;  %v135_v8 = vadd.f32 %v128_v61, %v470_v26  ;;  %v337_v26 = vsel %vm197_vm5, 1.0, %v427_v2 }
  0x5f   :  { %v134_v10 = vmul.f32 0.6931472, %v365_v6  ;;  %v137_v11 = vadd.f32 %v132_v4, %v472_v28  ;;  %v291_v20 = vrot.slane %v337_v26, %v494_v43 }
  0x60   :  { %v136_v12 = vadd.f32 %v130_v7, %v474_v30  ;;  %v193_v13 = vsub.f32 %v135_v8, %v171_v62  ;;  %v287_v30 = vrot.slane %v337_v26, %v487_v40 }
  0x61   :  { %v138_v14 = vadd.f32 %v134_v10, %v476_v31  ;;  %v195_v15 = vsub.f32 %v137_v11, %v185_v5  ;;  %v305_v25 = vsel %vm259_vm7, %v291_v20, 0.0 }
  0x62   :  { %v194_v16 = vsub.f32 %v136_v12, %v178_v0  ;;  %v304_v24 = vsel %vm259_vm7, %v287_v30, 0.0 }
  0x63   :  { %v196_v18 = vsub.f32 %v138_v14, %v192_v1  ;;  %v306_v35 = vadd.f32 %v305_v25, %v304_v24 }
  0x64   :  { %v203_v19 = vcombine.low %v193_v13, %v194_v16 }
  0x65   :  { %v218_v28 = vcombine.low %v195_v15, %v196_v18  ;;  %v308_v48 = vadd.f32 %v307_v44, %v306_v35 }
  0x66   :  { %v210_v31 = vrot.slane %v203_v19, %v209_v17 }
  0x67   :  { %v225_v3 = vrot.slane %v218_v28, %v209_v17 }
  0x68   :  { %v217_v22 = vrot.slane %v210_v31, %v209_v17 }
  0x69   :  { %v232_v23 = vrot.slane %v225_v3, %v209_v17 }
  0x6a   :  { %v235_v42 = vsel %vm197_vm5, %v217_v22, 0.0 }
  0x6b   :  { %v236_v27 = vsel %vm198_vm6, %v232_v23, 0.0  ;;  %v242_v29 = vrot.slane %v235_v42, %v487_v40  ;;  %v246_v32 = vrot.slane %v235_v42, %v494_v43 }
  0x6c   :  { %v250_v33 = vrot.slane %v236_v27, %v487_v40  ;;  %v254_v34 = vrot.slane %v236_v27, %v494_v43  ;;  %v309_v40 = vsel %vm259_vm7, %v299_v38, 0.0 }
  0x6d   :  { %v260_v36 = vsel %vm259_vm7, %v242_v29, 0.0  ;;  %v261_v37 = vsel %vm259_vm7, %v246_v32, 0.0  ;;  %v310_v50 = vadd.f32 %v309_v40, %v308_v48 }
  0x6e   :  { %v262_v41 = vadd.f32 %v261_v37, %v260_v36  ;;  %v263_v45 = vsel %vm259_vm7, %v250_v33, 0.0  ;;  %v265_v46 = vsel %vm259_vm7, %v254_v34, 0.0 }
  0x70   :  { %v264_v47 = vadd.f32 %v263_v45, %v262_v41 }
  0x72   :  { %v266_v49 = vadd.f32 %v265_v46, %v264_v47 }
  0x74   :  { %267 = vadd.xlane.f32.xlu0 %v266_v49 }
  0x78   :  { %311 = vadd.xlane.f32.xlu0 %v310_v50 }
  0xfd   :  { %v268_v51 = vpop.xlane.xlu0 %267 }
  0xfe   :  { %v269_v52 = vrot.slane %v268_v51, 4 }
 0x100   :  { %v270_v53 = vadd.f32 %v269_v52, %v268_v51 }
 0x101   :  { %v312_v54 = vpop.xlane.xlu0 %311 }
 0x102   :  { %v271_v43 = vrot.slane %v270_v53, 2  ;;  %v313_v55 = vrot.slane %v312_v54, 4 }
 0x104   :  { %v314_v56 = vadd.f32 %v313_v55, %v312_v54  ;;  %v272_v57 = vadd.f32 %v271_v43, %v270_v53 }
 0x106   :  { %v315_v58 = vrot.slane %v314_v56, 2  ;;  %v273_v59 = vrot.slane %v272_v57, 1 }
 0x108   :  { %v316_v60 = vadd.f32 %v315_v58, %v314_v56  ;;  %v274_v61 = vadd.f32 %v273_v59, %v272_v57 }
 0x10a   :  { %339 = vpush %v274_v61  ;;  %v317_v62 = vrot.slane %v316_v60, 1 }
 0x10c   :  { %v318_v63 = vadd.f32 %v317_v62, %v316_v60 }
 0x10e   :  { %341 = vpush %v318_v63 }
 0x13b   :  { %s340_s0 = spop %339 }
 0x13c   :  { %277 = sst [smem:[#allocation7]] %s340_s0 }
 0x13f   :  { %s342_s1 = spop %341 }
 0x140   :  { %321 = sst [smem:[#allocation7 + $0x1]] %s342_s1 }
 0x141   :  { %329 = dma.smem_to_hbm %s428_s23, 16, %s576_s2, [#allocation4]  }
 0x142   :  { %418 = dma.done.wait [#allocation4], 16  }
 0x143   :  { %419 = vsyncadd [#allocation4], 4294967280 }
 0x144   :  { %333 = sfence }
 0x145   :  { %334 = vsyncpa [#allocation3], 1 }
 0x146   :  { %335 = vsyncpa [#allocation6], 1 }
 0x147   :  { %336 = vsyncpa [#allocation4], 1 }

</bundles_post_ra>
